<compile_context>
chip_gen: v6e
topology: v6e:2x2x1
jax: 0.10.0
libtpu: 0.0.40
codegen_flags: <defaults>
</compile_context>

<pallas_src>
import functools

import jax
import jax.numpy as jnp
from jax.experimental import pallas as pl
from jax.experimental.pallas import tpu as pltpu


# ----------------------------- kernel ---------------------------------------

def _shuffle_hbm_kernel(off_ref, x_hbm, o_hbm, sem, *, n_bins):
    """out[b, :, :] = x[b, off[b]:off[b]+n_bins, :] as one HBM->HBM DMA.

    off_ref : SMEM (B,) int32 per-batch frequency offsets (scalar prefetch)
    x_hbm   : (B, n_bins + 2*margin, T) input, memory_space=pl.ANY (raw HBM)
    o_hbm   : (B, n_bins, T) output,           memory_space=pl.ANY (raw HBM)
    sem     : (2,) DMA semaphores for the cross-grid-step double buffer
    """
    b = pl.program_id(0)
    nb = pl.num_programs(0)
    slot = b % 2

    # TODO(synk): off[b] is rarely a multiple of 8, so the source DMA starts
    # mid-(8,128) tile; if xprof shows a sublane-reformat slow path on the DMA
    # engine, benchmark reading from (off & ~7) (n_bins+8 rows) plus a VMEM
    # sublane shift against this direct gather.
    cur = pltpu.make_async_copy(
        x_hbm.at[b, pl.ds(off_ref[b], n_bins), :],
        o_hbm.at[b],
        sem.at[slot],
    )
    cur.start()

    # Wait for the copy issued on the *previous* grid step (every batch copies
    # an identical-size slab, so a descriptor built from this step's refs
    # carries the right byte count for the wait). This keeps 2 DMAs in flight.
    @pl.when(b > 0)
    def _():
        pltpu.make_async_copy(
            x_hbm.at[b, pl.ds(off_ref[b], n_bins), :],
            o_hbm.at[b],
            sem.at[1 - slot],
        ).wait()

    # Drain the in-flight copy on the final step.
    @pl.when(b == nb - 1)
    def _():
        cur.wait()


# ----------------------------- wrappers -------------------------------------

def shuffle_cqt_pallas(x, offsets, *, n_bins, margin):
    """Per-batch frequency-offset gather: [B, n_bins+2*margin, T] -> [B, n_bins, T]."""
    B, F_in, T = x.shape
    assert F_in == n_bins + 2 * margin
    assert offsets.shape == (B,)
    # Refs/DMAs have no runtime OOB checking; an out-of-range offset would
    # silently read adjacent memory, so clamp to the valid window.
    offsets = jnp.clip(offsets.astype(jnp.int32), 0, 2 * margin)
    return pl.pallas_call(
        functools.partial(_shuffle_hbm_kernel, n_bins=n_bins),
        out_shape=jax.ShapeDtypeStruct((B, n_bins, T), x.dtype),
        grid_spec=pltpu.PrefetchScalarGridSpec(
            num_scalar_prefetch=1,
            grid=(B,),
            in_specs=[pl.BlockSpec(memory_space=pl.ANY)],    # raw HBM ref
            out_specs=pl.BlockSpec(memory_space=pl.ANY),     # raw HBM ref
            scratch_shapes=[pltpu.SemaphoreType.DMA((2,))],
        ),
        compiler_params=pltpu.CompilerParams(
            dimension_semantics=("arbitrary",)),
    )(offsets, x)


def shuffle_cqt_xla(x, offsets, *, n_bins):
    """Pure-XLA baseline (per review): same data movement, but XLA can fuse it
    into the downstream consumer and skip the explicit HBM round trip entirely.
    Kept for benchmarking / reference; the module uses the Pallas path."""
    def one(xb, off):
        return jax.lax.dynamic_slice_in_dim(xb, off, n_bins, axis=0)
    return jax.vmap(one)(x, jnp.clip(offsets.astype(jnp.int32), 0, x.shape[1] - n_bins))


def crop_cqt(x, *, n_bins, margin):
    # Static slice: a single XLA copy that fuses into downstream consumers;
    # a Pallas call here would only add launch/grid-step overhead.
    assert x.shape[1] == n_bins + 2 * margin
    return x[:, margin:margin + n_bins, :]


class PseudoPitchShift:
    """JAX/Pallas port of the PyTorch PseudoPitchShift module."""

    def __init__(self, n_bins=128, margin=10, is_shift=False):
        self.n_bins = n_bins
        self.margin = margin
        self.is_shift = is_shift

    def __call__(self, x, key=None):
        if self.is_shift:
            if key is None:
                # Stateless JAX RNG: require an explicit key so the shift is
                # actually random across calls (a fixed PRNGKey(0) would not be).
                raise ValueError(
                    "PseudoPitchShift(is_shift=True) requires a PRNG key.")
            offsets = jax.random.randint(
                key, (x.shape[0],), 0, 2 * self.margin + 1, dtype=jnp.int32)
            return shuffle_cqt_pallas(
                x, offsets, n_bins=self.n_bins, margin=self.margin)
        return crop_cqt(x, n_bins=self.n_bins, margin=self.margin)


# ----------------------------- main -----------------------------------------

if __name__ == "__main__":
    n_bins, margin = 128, 10
    F_in = n_bins + 2 * margin  # 148

    key = jax.random.PRNGKey(0)
    kx, koff, kx3, koff3, kx1, koff1 = jax.random.split(key, 6)

    # --- crop path (is_shift=False, default forward): static slice ----------
    B, T = 2, 128
    x = jax.random.normal(kx, (B, F_in, T), dtype=jnp.float32)
    mod_crop = PseudoPitchShift(n_bins=n_bins, margin=margin, is_shift=False)
    out_crop = jax.block_until_ready(mod_crop(x))
    assert out_crop.shape == (B, n_bins, T)
    assert jnp.array_equal(out_crop, x[:, margin:-margin, :])

    # --- shuffle path (is_shift=True): per-batch HBM->HBM DMA kernel --------
    mod_shift = PseudoPitchShift(n_bins=n_bins, margin=margin, is_shift=True)
    out_shift = jax.block_until_ready(mod_shift(x, key=koff))
    offs = jax.random.randint(koff, (B,), 0, 2 * margin + 1, dtype=jnp.int32)
    ref_shift = jnp.stack(
        [x[b, int(offs[b]):int(offs[b]) + n_bins, :] for b in range(B)])
    assert out_shift.shape == (B, n_bins, T)
    assert jnp.array_equal(out_shift, ref_shift)
    assert jnp.array_equal(out_shift, shuffle_cqt_xla(x, offs, n_bins=n_bins))

    # --- odd batch + longer time axis (multiple pipelined grid steps) -------
    B3, T3 = 3, 256
    x3 = jax.random.normal(kx3, (B3, F_in, T3), dtype=jnp.float32)
    offs3 = jax.random.randint(koff3, (B3,), 0, 2 * margin + 1, dtype=jnp.int32)
    out3 = jax.block_until_ready(
        shuffle_cqt_pallas(x3, offs3, n_bins=n_bins, margin=margin))
    ref3 = jnp.stack(
        [x3[b, int(offs3[b]):int(offs3[b]) + n_bins, :] for b in range(B3)])
    assert out3.shape == (B3, n_bins, T3)
    assert jnp.array_equal(out3, ref3)

    # --- B=1 edge case (single grid step: start + drain the same copy) ------
    B1, T1 = 1, 128
    x1 = jax.random.normal(kx1, (B1, F_in, T1), dtype=jnp.float32)
    offs1 = jax.random.randint(koff1, (B1,), 0, 2 * margin + 1, dtype=jnp.int32)
    out1 = jax.block_until_ready(
        shuffle_cqt_pallas(x1, offs1, n_bins=n_bins, margin=margin))
    ref1 = x1[:, int(offs1[0]):int(offs1[0]) + n_bins, :]
    assert out1.shape == (B1, n_bins, T1)
    assert jnp.array_equal(out1, ref1)

    print("KERNEL_OK")
</pallas_src>

<mosaic_0001>
module attributes {stable_mosaic.version = 11 : i64} {
  func.func @_shuffle_hbm_kernel(%arg0: i32, %arg1: memref<2xi32, #tpu.memory_space<smem>>, %arg2: memref<2x148x128xf32, #tpu.memory_space<any>>, %arg3: memref<2x128x128xf32, #tpu.memory_space<any>>, %arg4: memref<2x!tpu.dma_semaphore, #tpu.memory_space<semaphore_mem>>) attributes {dimension_semantics = [#tpu.dimension_semantics<arbitrary>], iteration_bounds = array<i64: 2>, scalar_prefetch = 1 : i64, scratch_operands = 1 : i64, tpu.core_type = #tpu.core_type<tc>, window_params = [{}, {}]} {
    %c2_i32 = arith.constant 2 : i32
    %c0_i32 = arith.constant 0 : i32
    %0 = arith.cmpi eq, %c2_i32, %c0_i32 : i32
    %c1_i32 = arith.constant 1 : i32
    %1 = arith.select %0, %c1_i32, %c2_i32 : i32
    %2 = arith.remsi %arg0, %1 : i32
    %c0_i32_0 = arith.constant 0 : i32
    %3 = arith.cmpi ne, %2, %c0_i32_0 : i32
    %c0_i32_1 = arith.constant 0 : i32
    %4 = arith.cmpi slt, %2, %c0_i32_1 : i32
    %c0_i32_2 = arith.constant 0 : i32
    %5 = arith.cmpi slt, %1, %c0_i32_2 : i32
    %6 = arith.xori %4, %5 : i1
    %7 = arith.andi %6, %3 : i1
    %8 = arith.addi %2, %1 : i32
    %9 = arith.select %7, %8, %2 : i32
    %10 = arith.index_cast %arg0 : i32 to index
    %11 = memref.load %arg1[%10] : memref<2xi32, #tpu.memory_space<smem>>
    %c0_i32_3 = arith.constant 0 : i32
    %12 = tpu.memref_slice %arg2[%arg0, %11, %c0_i32_3] : memref<2x148x128xf32, #tpu.memory_space<any>> -> memref<1x128x128xf32, #tpu.memory_space<any>>
    %13 = tpu.memref_squeeze %12 : memref<1x128x128xf32, #tpu.memory_space<any>> -> memref<128x128xf32, #tpu.memory_space<any>>
    %c0_i32_4 = arith.constant 0 : i32
    %c0_i32_5 = arith.constant 0 : i32
    %14 = tpu.memref_slice %arg3[%arg0, %c0_i32_4, %c0_i32_5] : memref<2x128x128xf32, #tpu.memory_space<any>> -> memref<1x128x128xf32, #tpu.memory_space<any>>
    %15 = tpu.memref_squeeze %14 : memref<1x128x128xf32, #tpu.memory_space<any>> -> memref<128x128xf32, #tpu.memory_space<any>>
    %16 = tpu.memref_slice %arg4[%9] : memref<2x!tpu.dma_semaphore, #tpu.memory_space<semaphore_mem>> -> memref<1x!tpu.dma_semaphore, #tpu.memory_space<semaphore_mem>>
    %17 = tpu.memref_squeeze %16 : memref<1x!tpu.dma_semaphore, #tpu.memory_space<semaphore_mem>> -> memref<!tpu.dma_semaphore, #tpu.memory_space<semaphore_mem>>
    tpu.enqueue_dma source(%13 : memref<128x128xf32, #tpu.memory_space<any>>) target(%15 : memref<128x128xf32, #tpu.memory_space<any>>) target_semaphore(%17 : memref<!tpu.dma_semaphore, #tpu.memory_space<semaphore_mem>>)
    %c0_i32_6 = arith.constant 0 : i32
    %18 = arith.cmpi sgt, %arg0, %c0_i32_6 : i32
    %19 = arith.extui %18 : i1 to i32
    %c0_i32_7 = arith.constant 0 : i32
    %20 = arith.cmpi ne, %19, %c0_i32_7 : i32
    scf.if %20 {
      %24 = arith.index_cast %arg0 : i32 to index
      %25 = memref.load %arg1[%24] : memref<2xi32, #tpu.memory_space<smem>>
      %c1_i32_10 = arith.constant 1 : i32
      %26 = arith.subi %c1_i32_10, %9 : i32
      %c0_i32_11 = arith.constant 0 : i32
      %27 = tpu.memref_slice %arg2[%arg0, %25, %c0_i32_11] : memref<2x148x128xf32, #tpu.memory_space<any>> -> memref<1x128x128xf32, #tpu.memory_space<any>>
      %28 = tpu.memref_squeeze %27 : memref<1x128x128xf32, #tpu.memory_space<any>> -> memref<128x128xf32, #tpu.memory_space<any>>
      %c0_i32_12 = arith.constant 0 : i32
      %c0_i32_13 = arith.constant 0 : i32
      %29 = tpu.memref_slice %arg3[%arg0, %c0_i32_12, %c0_i32_13] : memref<2x128x128xf32, #tpu.memory_space<any>> -> memref<1x128x128xf32, #tpu.memory_space<any>>
      %30 = tpu.memref_squeeze %29 : memref<1x128x128xf32, #tpu.memory_space<any>> -> memref<128x128xf32, #tpu.memory_space<any>>
      %31 = tpu.memref_slice %arg4[%26] : memref<2x!tpu.dma_semaphore, #tpu.memory_space<semaphore_mem>> -> memref<1x!tpu.dma_semaphore, #tpu.memory_space<semaphore_mem>>
      %32 = tpu.memref_squeeze %31 : memref<1x!tpu.dma_semaphore, #tpu.memory_space<semaphore_mem>> -> memref<!tpu.dma_semaphore, #tpu.memory_space<semaphore_mem>>
      tpu.wait_dma2 semaphore(%32 : memref<!tpu.dma_semaphore, #tpu.memory_space<semaphore_mem>>) src(%28 : memref<128x128xf32, #tpu.memory_space<any>>) dst(%30 : memref<128x128xf32, #tpu.memory_space<any>>)
    } else {
    }
    %c1_i32_8 = arith.constant 1 : i32
    %21 = arith.cmpi eq, %arg0, %c1_i32_8 : i32
    %22 = arith.extui %21 : i1 to i32
    %c0_i32_9 = arith.constant 0 : i32
    %23 = arith.cmpi ne, %22, %c0_i32_9 : i32
    scf.if %23 {
      %c0_i32_10 = arith.constant 0 : i32
      %24 = tpu.memref_slice %arg2[%arg0, %11, %c0_i32_10] : memref<2x148x128xf32, #tpu.memory_space<any>> -> memref<1x128x128xf32, #tpu.memory_space<any>>
      %25 = tpu.memref_squeeze %24 : memref<1x128x128xf32, #tpu.memory_space<any>> -> memref<128x128xf32, #tpu.memory_space<any>>
      %c0_i32_11 = arith.constant 0 : i32
      %c0_i32_12 = arith.constant 0 : i32
      %26 = tpu.memref_slice %arg3[%arg0, %c0_i32_11, %c0_i32_12] : memref<2x128x128xf32, #tpu.memory_space<any>> -> memref<1x128x128xf32, #tpu.memory_space<any>>
      %27 = tpu.memref_squeeze %26 : memref<1x128x128xf32, #tpu.memory_space<any>> -> memref<128x128xf32, #tpu.memory_space<any>>
      %28 = tpu.memref_slice %arg4[%9] : memref<2x!tpu.dma_semaphore, #tpu.memory_space<semaphore_mem>> -> memref<1x!tpu.dma_semaphore, #tpu.memory_space<semaphore_mem>>
      %29 = tpu.memref_squeeze %28 : memref<1x!tpu.dma_semaphore, #tpu.memory_space<semaphore_mem>> -> memref<!tpu.dma_semaphore, #tpu.memory_space<semaphore_mem>>
      tpu.wait_dma2 semaphore(%29 : memref<!tpu.dma_semaphore, #tpu.memory_space<semaphore_mem>>) src(%25 : memref<128x128xf32, #tpu.memory_space<any>>) dst(%27 : memref<128x128xf32, #tpu.memory_space<any>>)
    } else {
    }
    return
  }
}

</mosaic_0001>

<bundles_post_ra>
// kernel: tpu_custom_call.1
= control target key start
LH: loop header
LB: loop body
LE: loop exit
PB: predicated region body
PF: predicated region fallthrough
CT: control target
= control target key end

     0   :  { %s224_s0 = inlined_call_operand.vmem [shape: s32[2], index: 0, kind: input, shape index: {}]   ;;  %s225_s1 = inlined_call_operand.vmem [shape: f32[2,148,128], index: 1, kind: input, shape index: {}]   ;;  %s226_s2 = inlined_call_operand.hbm [shape: f32[2,128,128], index: 2, kind: output, shape index: {}]  }
   0x1   :  { %s7_s11 = sshll.u32 %s224_s0, 4  ;;  %s8_s11 = int_to_ptr.vmem [resolvable:$true] %s7_s11 }
   0x2   :  { %s118_s12 = scalar_lea.vmem %s8_s11, 16  ;;  %p123_p1 = scmp.lt.s32.totalorder %s8_s11, %s8_s11 }
   0x3   :  { %p119_p0 = scmp.ne.s32.totalorder %s8_s11, %s118_s12  ;;  %p124_p2 = scmp.lt.s32.totalorder %s118_s12, %s118_s12 }
   0x5   :  { %p125_p3 = por %p124_p2, %p123_p1 }
   0x7   :  { %p126_p4 = pnand %p125_p3, %p119_p0 }
   0x9   :  { %129 = shalt.err (!%p126_p4)  }
   0xa   :  { %s170_s13 = smov [#allocation4]  }
   0xb   :  { %10 = dma.vmem_to_smem %s8_s11, 16, %s170_s13, [#allocation3] }
   0xc   :  { %156 = dma.done.wait [#allocation3], 16 }
   0xd   :  { %157 = vsyncadd [#allocation3], 4294967280 }
   0xe   :  { %12 = sfence }
   0xf   :  { %s189_s14 = smov 0  }
  0x10 LB: > { %p20_p5 = scmp.lt.s32.totalorder %s168_s14, 0  ;;  %s21_s0 = ssub.s32 0, %s168_s14  ;;  %s168_s14 = sphi %s189_s14, %s18_s14  }
  0x11   : > { %s93_s15 = smin.u32 %s168_s14, %s21_s0  ;;  %s32_s16 = sld [smem:[#allocation4 + %s168_s14]] }
  0x12   : > { %s23_s17 = sand.u32 1, %s93_s15   ;;  %s33_s19 = smul.u32 152, %s168_s14 }
  0x13   : > { %s24_s18 = ssub.s32 0, %s23_s17  ;;  %s102_s20 = sshll.u32 %s168_s14, 11 }
  0x14   : > { %s228_s18 = smov (!%p20_p5, %s24_s18), %s23_s17  ;;  %p107_p7 = scmp.gt.s32.totalorder %s168_s14, 0 }
  0x15   : > { %p95_p6 = scmp.lt.s32.totalorder %s228_s18, 0  ;;  %s30_s21 = sadd.s32 2, %s228_s18 }
  0x16   : > { %s38_s28 = scalar_lea.hbm %s226_s2, %s102_s20  ;;  %s132_s7 = sshll.u32 %s225_s1, 4  ;;  %s133_s7 = int_to_ptr.vmem [resolvable:$false] %s132_s7 }
  0x17   : > { %s34_s22 = sadd.s32 %s33_s19, %s32_s16  ;;  %s230_s21 = smov (!%p95_p6, %s30_s21), %s228_s18 }
  0x18   : > { %s35_s25 = scalar_lea.vmem %s225_s1, %s34_s22  ;;  %s56_s30 = ssub.s32 1, %s230_s21 }
  0x19   : > { %s47_s29 = sshll.u32 %s35_s25, 4  ;;  %s39_s3 = scalar_lea.sflag [#allocation2], %s230_s21  ;;  %s48_s29 = int_to_ptr.vmem [resolvable:$true] %s47_s29 }
  0x1a   : > { %s130_s4 = scalar_lea.vmem %s48_s29, 2048  ;;  %s134_s8 = scalar_lea.vmem %s133_s7, 4864 }
  0x1b   : > { %p131_p8 = scmp.ne.s32.totalorder %s48_s29, %s130_s4  ;;  %p135_p9 = scmp.lt.s32.totalorder %s48_s29, %s133_s7 }
  0x1c   : > { %p136_p10 = scmp.lt.s32.totalorder %s134_s8, %s130_s4 }
  0x1e   : > { %p137_p11 = por %p136_p10, %p135_p9 }
  0x20   : > { %p138_p12 = pnand %p137_p11, %p131_p8 }
  0x22   : > { %141 = shalt.err (!%p138_p12)  }
  0x23   : > { %s142_s9 = scalar_lea.hbm %s38_s28, 2048  ;;  %s144_s12 = scalar_lea.hbm %s226_s2, 4096 }
  0x24   : > { %p143_p13 = scmp.ne.s32.totalorder %s38_s28, %s142_s9  ;;  %p145_p0 = scmp.lt.s32.totalorder %s38_s28, %s226_s2 }
  0x25   : > { %p146_p1 = scmp.lt.s32.totalorder %s144_s12, %s142_s9 }
  0x27   : > { %p147_p2 = por %p146_p1, %p145_p0 }
  0x29   : > { %p148_p3 = pnand %p147_p2, %p143_p13 }
  0x2b   : > { %151 = shalt.err (!%p148_p3)  }
  0x2c   : > { %50 = dma.vmem_to_hbm [thread:$0]  %s48_s29, 2048, %s38_s28, %s39_s3 }
  0x2d   : > { %s57_s15 = scalar_lea.sflag [#allocation2], %s56_s30 }
  0x2e   : > { %159 = dma.done.wait (%p107_p7), %s57_s15, 2048 }
  0x2f   : > { %161 = vsyncadd (%p107_p7), %s57_s15, 4294965248  ;;  %p108_p4 = scmp.eq.s32.totalorder %s168_s14, 1 }
  0x31   : > { %163 = dma.done.wait (%p108_p4), %s39_s3, 2048 }
  0x32   : > { %165 = vsyncadd (%p108_p4), %s39_s3, 4294965248  ;;  %s18_s14 = sadd.s32 1, %s168_s14  }
  0x33   : > { %p15_p5 = scmp.ge.s32.totalorder %s18_s14, 2  }
  0x35   :  { %17 = sbr.rel (!%p15_p5) target bundleno = 16 (0x10), region = 36 }
  0x3a   :  { %68 = vsyncmov [#allocation2] }
  0x3d   :  { %s69_s16 = vpop.sfrf %68 }
  0x3e   :  { %p100_p6 = scmp.ne.s32.totalorder %s69_s16, 0 }
  0x40   :  { %73 = shalt.err (%p100_p6)  }
  0x41   :  { %75 = vsyncmov [#allocation2 + $0x1] }
  0x44   :  { %s76_s17 = vpop.sfrf %75 }
  0x45   :  { %p101_p8 = scmp.ne.s32.totalorder %s76_s17, 0 }
  0x47   :  { %80 = shalt.err (%p101_p8)  }

</bundles_post_ra>
